<compile_context>
chip_gen: v7x
topology: tpu7x:2x2x1
jax: 0.10.0
libtpu: 0.0.40
codegen_flags: <defaults>
</compile_context>

<pallas_src>
import functools

import jax
import jax.numpy as jnp
from jax.experimental import pallas as pl
from jax.experimental.pallas import tpu as pltpu

_LANES = 128            # TPU lane width; n_classes is padded up to this
_SUBLANES = 8           # batch tiles are kept 8-row aligned
_MAX_TM = 1024          # per-grid-step overhead amortization cap (512-1024 sweet spot)
_MIN_GRID_STEPS = 4     # when bs > 16: keep >= 4 grid steps (megacore + pipelining)


def _head_kernel(x_ref, w_ref, b_ref, o_ref):
    # x_ref: [TM, F]   activation tile (bf16/f32), streamed over the grid
    # w_ref: [F, Cp]   pre-transposed lane-padded weight (constant index_map)
    # b_ref: [1, Cp]   lane-padded bias, f32 (constant index_map)
    # o_ref: [TM, Cp]  lane-dense output tile
    acc = jnp.dot(x_ref[...], w_ref[...], preferred_element_type=jnp.float32)
    o_ref[...] = (acc + b_ref[...]).astype(o_ref.dtype)


def prepare_head_params(weight, bias, *, compute_dtype=jnp.bfloat16,
                        bias_pad_value=0.0):
    """One-time parameter preparation (call at load time, NOT per forward).

    weight: [n_classes, F]  (PyTorch nn.Linear layout)
    bias:   [n_classes]
    compute_dtype: streaming dtype of activations/weight (bf16 halves HBM bytes;
                   the matmul still accumulates in f32).
    bias_pad_value: value written into padded (fake) class slots.  Keep 0.0 when
                    the forward trims the output; use a large negative value
                    (e.g. -1e30) if a consumer will argmax/softmax the padded
                    [bs, Cp] output directly (trim_output=False).
    returns (w_padded [F, Cp], b_padded [1, Cp] f32) with Cp = round_up(C, 128).
    """
    n_classes, feat = weight.shape
    c_pad = pl.cdiv(n_classes, _LANES) * _LANES
    w_p = jnp.zeros((feat, c_pad), compute_dtype)
    w_p = w_p.at[:, :n_classes].set(weight.T.astype(compute_dtype))
    b_p = jnp.full((1, c_pad), bias_pad_value, jnp.float32)
    b_p = b_p.at[0, :n_classes].set(bias.astype(jnp.float32))
    return w_p, b_p


def _vmem_physical_bytes():
    try:
        return int(pltpu.get_tpu_info().vmem_capacity_bytes)
    except Exception:
        return 64 * 1024 * 1024      # conservative fallback (v7x physical VMEM)


def _choose_batch_tile(bs, feat, c_pad, act_bytes, w_bytes, out_bytes):
    """Pick batch-tile rows and an explicit scoped-VMEM limit for this chip."""
    vmem_phys = _vmem_physical_bytes()
    budget = vmem_phys // 2                       # headroom for compiler scratch
    # Grid-resident weight + bias, conservatively counted as double-buffered
    # (their index_map is constant; pl.Buffered(1) would halve this).
    fixed = 2 * feat * c_pad * w_bytes + 2 * c_pad * 4
    # Double-buffered activation tile + double-buffered output tile, per row.
    per_row = 2 * feat * act_bytes + 2 * c_pad * out_bytes
    tm_budget = max((budget - fixed) // per_row, _SUBLANES)
    # Megacore / pipeline: keep >= _MIN_GRID_STEPS grid steps once bs > 16.
    tm_parallel = pl.cdiv(bs, _MIN_GRID_STEPS) if bs > 16 else bs
    tm = min(bs, _MAX_TM, tm_budget, tm_parallel)
    if tm < bs:
        # Partial tiles must stay 8-row (sublane) aligned; a full-batch tile
        # (tm == bs) is always legal.
        tm = max((tm // _SUBLANES) * _SUBLANES, _SUBLANES)
    usage = fixed + tm * per_row
    vmem_limit = min(vmem_phys, max(2 * usage + (4 << 20), 32 << 20))
    return int(tm), int(vmem_limit)


@functools.partial(jax.jit, static_argnames=("n_classes", "trim_output"))
def classification_head_forward(x, w_padded, b_padded, *, n_classes,
                                trim_output=True):
    """
    x:        [bs, n_vars, d_model, num_patch]
    w_padded: [F, Cp]  from prepare_head_params (streaming dtype, e.g. bf16)
    b_padded: [1, Cp]  f32, from prepare_head_params
    returns   [bs, n_classes]   (or padded [bs, Cp] when trim_output=False --
              only safe for argmax/softmax consumers if bias_pad_value << 0)
    """
    bs, n_vars, d_model, _ = x.shape
    feat = n_vars * d_model
    c_pad = w_padded.shape[1]
    assert w_padded.shape[0] == feat and b_padded.shape == (1, c_pad)

    # Last-patch slice + flatten + cast to the streaming dtype.  Dropout is
    # identity at inference.  allow_input_fusion (below) lets XLA fuse this
    # into the kernel's input DMA; otherwise it costs one compact bs*F copy.
    compute_dtype = w_padded.dtype
    xf = x[:, :, :, -1].reshape(bs, feat).astype(compute_dtype)

    out_dtype = x.dtype
    act_bytes = jnp.dtype(compute_dtype).itemsize
    w_bytes = act_bytes
    out_bytes = jnp.dtype(out_dtype).itemsize
    tm, vmem_limit = _choose_batch_tile(bs, feat, c_pad,
                                        act_bytes, w_bytes, out_bytes)
    grid = (pl.cdiv(bs, tm),)

    # Scheduler hint only.  NOTE: real HBM reads of x are amplified ~num_patch x
    # by the strided last-patch gather when the slice is fused into the DMA.
    cost = pl.CostEstimate(
        flops=2 * bs * feat * c_pad,
        transcendentals=0,
        bytes_accessed=(bs * feat * act_bytes + feat * c_pad * w_bytes
                        + c_pad * 4 + bs * c_pad * out_bytes),
    )

    out = pl.pallas_call(
        _head_kernel,
        out_shape=jax.ShapeDtypeStruct((bs, c_pad), out_dtype),
        grid_spec=pltpu.PrefetchScalarGridSpec(
            num_scalar_prefetch=0,
            grid=grid,
            in_specs=[
                pl.BlockSpec((tm, feat), lambda i: (i, 0)),      # streamed acts
                pl.BlockSpec((feat, c_pad), lambda i: (0, 0)),   # resident weight
                pl.BlockSpec((1, c_pad), lambda i: (0, 0)),      # resident bias
            ],
            out_specs=pl.BlockSpec((tm, c_pad), lambda i: (i, 0)),
        ),
        compiler_params=pltpu.CompilerParams(
            dimension_semantics=("parallel",),        # shard batch tiles over TCs
            allow_input_fusion=[True, False, False],  # fuse slice/reshape/cast of x
            vmem_limit_bytes=vmem_limit,
        ),
        cost_estimate=cost,
    )(xf, w_padded, b_padded)

    if trim_output:
        # Load-bearing: padded class columns are fake logits.
        return out[:, :n_classes]
    return out


if __name__ == "__main__":
    # Small shapes consistent with the module's forward contract.
    bs, n_vars, d_model, num_patch = 2, 4, 32, 8
    n_classes = 10
    feat = n_vars * d_model

    key = jax.random.PRNGKey(0)
    k_x, k_w, k_b = jax.random.split(key, 3)

    x = jax.random.normal(k_x, (bs, n_vars, d_model, num_patch), dtype=jnp.float32)

    # Deterministic nn.Linear-style init: U(-1/sqrt(F), 1/sqrt(F)).
    bound = 1.0 / jnp.sqrt(jnp.float32(feat))
    weight = jax.random.uniform(k_w, (n_classes, feat), jnp.float32, -bound, bound)
    bias = jax.random.uniform(k_b, (n_classes,), jnp.float32, -bound, bound)

    # Plain-JAX reference.
    y_ref = x[:, :, :, -1].reshape(bs, feat) @ weight.T + bias

    # 1) f32 streaming path: exactness check against the reference.
    w32, b32 = prepare_head_params(weight, bias, compute_dtype=jnp.float32)
    y32 = jax.block_until_ready(
        classification_head_forward(x, w32, b32, n_classes=n_classes))
    assert y32.shape == (bs, n_classes)
    assert jnp.allclose(y32, y_ref, atol=1e-5, rtol=1e-5)

    # 2) bf16 streaming path (default; halves HBM bytes): tolerance check.
    wbf, bbf = prepare_head_params(weight, bias)
    ybf = jax.block_until_ready(
        classification_head_forward(x, wbf, bbf, n_classes=n_classes))
    assert ybf.shape == (bs, n_classes)
    assert jnp.allclose(ybf, y_ref, atol=3e-2, rtol=3e-2)

    print("KERNEL_OK")
</pallas_src>

<mosaic_0001>
module attributes {stable_mosaic.version = 11 : i64} {
  func.func @_head_kernel(%arg0: i32, %arg1: memref<2x128xf32, #tpu.memory_space<vmem>>, %arg2: memref<128x128xf32, #tpu.memory_space<vmem>>, %arg3: memref<1x128xf32, #tpu.memory_space<vmem>>, %arg4: memref<2x128xf32, #tpu.memory_space<vmem>>) attributes {dimension_semantics = [#tpu.dimension_semantics<parallel>], iteration_bounds = array<i64: 1>, scalar_prefetch = 0 : i64, scratch_operands = 0 : i64, tpu.core_type = #tpu.core_type<tc>, window_params = [{transform_indices = @transform_0, window_bounds = array<i64: 2, 128>}, {pipeline_mode = #tpu.pipeline_mode<synchronous>, transform_indices = @transform_1, window_bounds = array<i64: 128, 128>}, {pipeline_mode = #tpu.pipeline_mode<synchronous>, transform_indices = @transform_2, window_bounds = array<i64: 1, 128>}, {transform_indices = @transform_3, window_bounds = array<i64: 2, 128>}]} {
    %c0 = arith.constant 0 : index
    %c0_0 = arith.constant 0 : index
    %0 = vector.load %arg1[%c0, %c0_0] : memref<2x128xf32, #tpu.memory_space<vmem>>, vector<2x128xf32>
    %c0_1 = arith.constant 0 : index
    %c0_2 = arith.constant 0 : index
    %1 = vector.load %arg2[%c0_1, %c0_2] : memref<128x128xf32, #tpu.memory_space<vmem>>, vector<128x128xf32>
    %cst = arith.constant dense<0.000000e+00> : vector<2x128xf32>
    %2 = tpu.matmul %0, %1, %cst {dimension_numbers = #tpu.dot_dimension_numbers<[1], [0], [0], [1], [0, 0, 1, 1], [], []>} : vector<2x128xf32>, vector<128x128xf32>, vector<2x128xf32> -> vector<2x128xf32>
    %c0_3 = arith.constant 0 : index
    %c0_4 = arith.constant 0 : index
    %3 = vector.load %arg3[%c0_3, %c0_4] : memref<1x128xf32, #tpu.memory_space<vmem>>, vector<1x128xf32>
    %4 = vector.broadcast %3 : vector<1x128xf32> to vector<2x128xf32>
    %5 = arith.addf %2, %4 : vector<2x128xf32>
    %c0_5 = arith.constant 0 : index
    %c0_6 = arith.constant 0 : index
    %6 = vector.load %arg4[%c0_5, %c0_6] : memref<2x128xf32, #tpu.memory_space<vmem>>, vector<2x128xf32>
    tpu.vector_store %arg4[%c0_5, %c0_6], %5 {strides = array<i32>} : memref<2x128xf32, #tpu.memory_space<vmem>>, vector<2x128xf32>,
    return
  }
  func.func @transform_0(%arg0: i32) -> (i32, i32) {
    %c0_i32 = arith.constant 0 : i32
    %c0_i32_0 = arith.constant 0 : i32
    return %arg0, %c0_i32 : i32, i32
  }
  func.func @transform_1(%arg0: i32) -> (i32, i32) {
    %c0_i32 = arith.constant 0 : i32
    %c0_i32_0 = arith.constant 0 : i32
    %c0_i32_1 = arith.constant 0 : i32
    return %c0_i32, %c0_i32_0 : i32, i32
  }
  func.func @transform_2(%arg0: i32) -> (i32, i32) {
    %c0_i32 = arith.constant 0 : i32
    %c0_i32_0 = arith.constant 0 : i32
    %c0_i32_1 = arith.constant 0 : i32
    return %c0_i32, %c0_i32_0 : i32, i32
  }
  func.func @transform_3(%arg0: i32) -> (i32, i32) {
    %c0_i32 = arith.constant 0 : i32
    %c0_i32_0 = arith.constant 0 : i32
    return %arg0, %c0_i32 : i32, i32
  }
}

</mosaic_0001>

<bundles_post_ra>
// kernel: squeeze.1
= control target key start
LH: loop header
LB: loop body
LE: loop exit
PB: predicated region body
PF: predicated region fallthrough
CT: control target
= control target key end

     0   :  { %s29_s10 = smov 3  ;;  %s10_s11 = smov 3  ;;  %vm12_vm0 = vcmask 261120   ;;  %vm19_vm1 = vcmask 1048320   ;;  %vm26_vm2 = vcmask 785920   ;;  %vm33_vm3 = vcmask 523520   ;;  %s67_s0 = inlined_call_operand.vmem [shape: f32[2,4,32], index: 0, kind: input, shape index: {}]   ;;  %s68_s1 = inlined_call_operand.vmem [shape: f32[2,128], index: 1, kind: output, shape index: {}]  }
   0x1   :  { %v41_v0 = vld [vmem:[%s67_s0 + $0x4] sm:$0xf]  ;;  %v8_v1 = vld [vmem:[%s67_s0] sm:$0xf]  ;;  %s15_s0 = smov 3  ;;  %s22_s12 = smov 3 }
   0x2   :  { %7 = vst [vmem:[#allocation1 + $0x8] sm:$0xf] %v41_v0  ;;  %9 = vst [vmem:[#allocation1] sm:$0xf] %v8_v1  ;;  %s45_s13 = smov 96   ;;  %s46_s14 = smov 32  }
   0x3   :  { %s47_s15 = smov 64  }
   0x9   :  { %v16_v2 = vld [vmem:[#allocation1 + $0x3] ss:$8 sm:%s15_s0]   ;;  %v30_v3 = vld [vmem:[#allocation1 + $0x1] ss:$8 sm:%s29_s10]   ;;  %v11_v4 = vld [vmem:[#allocation1] ss:$8 sm:%s10_s11]  }
   0xa   :  { %17 = vrot.lane.b32.xlu0 %v16_v2, %s45_s13  ;;  %31 = vrot.lane.b32.xlu1 %v30_v3, %s46_s14  ;;  %v23_v5 = vld [vmem:[#allocation1 + $0x2] ss:$8 sm:%s22_s12]   ;;  %13 = vst.msk [vmem:[#allocation0] sm:$0x3] %vm12_vm0, %v11_v4  }
   0xe   :  { %24 = vrot.lane.b32.xlu0 %v23_v5, %s47_s15 }
  0x7c   :  { %v18_v6 = vpop.permute.xlu0 %17   ;;  %v32_v7 = vpop.permute.xlu1 %31  }
  0x7d   :  { %20 = vst.msk [vmem:[#allocation0] sm:$0x3] %vm19_vm1, %v18_v6  }
  0x80   :  { %v25_v8 = vpop.permute.xlu0 %24  }
  0x81   :  { %27 = vst.msk [vmem:[#allocation0] sm:$0x3] %vm26_vm2, %v25_v8  }
  0x82   :  { %34 = vst.msk [vmem:[#allocation0] sm:$0x3] %vm33_vm3, %v32_v7  }
  0x89   :  { %v38_v9 = vld [vmem:[#allocation0] sm:$0x3] }
  0x8a   :  { %40 = vst [vmem:[%s68_s1] sm:$0x3] %v38_v9 }

// kernel: classification_head_forward.1
= control target key start
LH: loop header
LB: loop body
LE: loop exit
PB: predicated region body
PF: predicated region fallthrough
CT: control target
= control target key end

     0   :  { %8 = vsyncpa [#allocation3], 0  ;;  %s328_s0 = inlined_call_operand.vmem [shape: f32[2,128], index: 0, kind: input, shape index: {}]   ;;  %s329_s1 = inlined_call_operand.hbm [shape: f32[128,128], index: 1, kind: input, shape index: {}]   ;;  %s330_s2 = inlined_call_operand.vmem [shape: f32[1,128], index: 2, kind: input, shape index: {}]   ;;  %s331_s3 = inlined_call_operand.hbm [shape: f32[2,128], index: 3, kind: output, shape index: {}]  }
   0x1   :  { %9 = vsyncpa [#allocation4], 0  ;;  %s271_s12 = smov [#allocation2]   ;;  %s223_s16 = scalar_lea.hbm %s329_s1, 2048 }
   0x2   :  { %s17_s13 = sshll.u32 %s271_s12, 4  ;;  %p224_p0 = scmp.ne.s32.totalorder %s329_s1, %s223_s16  ;;  %s18_s13 = int_to_ptr.vmem [resolvable:$true] %s17_s13 }
   0x3   :  { %p227_p1 = scmp.lt.u32.totalorder %s223_s16, %s329_s1 }
   0x5   :  { %p229_p2 = pnand %p227_p1, %p224_p0 }
   0x7   :  { %232 = shalt.err (!%p229_p2)
}
   0x8   :  { %s233_s21 = scalar_lea.vmem %s18_s13, 2048  ;;  %p238_p4 = scmp.lt.s32.totalorder %s18_s13, %s18_s13 }
   0x9   :  { %p234_p3 = scmp.ne.s32.totalorder %s18_s13, %s233_s21  ;;  %p239_p5 = scmp.lt.s32.totalorder %s233_s21, %s233_s21 }
   0xb   :  { %p240_p6 = por %p239_p5, %p238_p4 }
   0xd   :  { %p241_p7 = pnand %p240_p6, %p234_p3 }
   0xf   :  { %244 = shalt.err (!%p241_p7)
}
  0x10   :  { %s272_s22 = smov 128   ;;  %s273_s23 = smov 8  }
  0x11   :  { %23 = dma.hbm_to_vmem [thread:$0]  %s329_s1, 2048, %s18_s13, [#allocation3], %s272_s22, %s272_s22, %s273_s23  }
  0x12   :  { %267 = dma.done.wait [#allocation3], 2048  }
  0x13   :  { %268 = vsyncadd [#allocation3], 4294965248  ;;  %v274_v0 = vmov 0.0|0.0   ;;  %vm275_vm0 = vmmov 0   ;;  %v276_v1 = vmov 0.0   ;;  %v30_v2 = vld [vmem:[#allocation2] sm:$0xff] }
  0x14   :  { %192 = vmatprep.subr.bf16.mxu0 %v274_v0  ;;  %189 = vmatprep.mubr.msk.f32.mxu0 %vm275_vm0, %v276_v1  ;;  %v31_v3 = vld [vmem:[#allocation2 + $0x8] sm:$0xff]  ;;  %v32_v4 = vld [vmem:[#allocation2 + $0x10] sm:$0xff]  ;;  %v33_v6 = vld [vmem:[#allocation2 + $0x18] sm:$0xff]  ;;  %s277_s29 = smov [#allocation5]  }
  0x15   :  { %v193_v5 = vpack.c.bf16 %v31_v3, %v30_v2  ;;  %v196_v7 = vpack.c.bf16 %v33_v6, %v32_v4  ;;  %v34_v8 = vld [vmem:[#allocation2 + $0x20] sm:$0xff]  ;;  %v35_v9 = vld [vmem:[#allocation2 + $0x28] sm:$0xff]  ;;  %v36_v11 = vld [vmem:[#allocation2 + $0x30] sm:$0xff]  ;;  %s130_s30 = sshll.u32 %s277_s29, 4  ;;  %s131_s30 = int_to_ptr.vmem [resolvable:$true] %s130_s30 }
  0x16   :  { %v199_v10 = vpack.c.bf16 %v35_v9, %v34_v8  ;;  %v37_v12 = vld [vmem:[#allocation2 + $0x38] sm:$0xff]  ;;  %v38_v14 = vld [vmem:[#allocation2 + $0x40] sm:$0xff]  ;;  %v39_v15 = vld [vmem:[#allocation2 + $0x48] sm:$0xff]  ;;  %s245_s4 = scalar_lea.vmem %s131_s30, 32  ;;  %p250_p9 = scmp.lt.s32.totalorder %s131_s30, %s131_s30 }
  0x17   :  { %194 = vmatpush3.bf16.msra.mxu0 %v193_v5  ;;  %v202_v13 = vpack.c.bf16 %v37_v12, %v36_v11  ;;  %v205_v16 = vpack.c.bf16 %v39_v15, %v38_v14  ;;  %v40_v17 = vld [vmem:[#allocation2 + $0x50] sm:$0xff]  ;;  %v41_v18 = vld [vmem:[#allocation2 + $0x58] sm:$0xff]  ;;  %v42_v20 = vld [vmem:[#allocation2 + $0x60] sm:$0xff]  ;;  %p246_p8 = scmp.ne.s32.totalorder %s131_s30, %s245_s4  ;;  %p251_p10 = scmp.lt.s32.totalorder %s245_s4, %s245_s4 }
  0x18   :  { %195 = vmatprep.subr.bf16.mxu0 %v274_v0  ;;  %v208_v19 = vpack.c.bf16 %v41_v18, %v40_v17  ;;  %v43_v21 = vld [vmem:[#allocation2 + $0x68] sm:$0xff]  ;;  %v44_v23 = vld [vmem:[#allocation2 + $0x70] sm:$0xff]  ;;  %v45_v24 = vld [vmem:[#allocation2 + $0x78] sm:$0xff] }
  0x19   :  { %v211_v22 = vpack.c.bf16 %v43_v21, %v42_v20  ;;  %v214_v25 = vpack.c.bf16 %v45_v24, %v44_v23  ;;  %v29_v26 = vld [vmem:[%s328_s0] sm:$0x3]  ;;  %p252_p11 = por %p251_p10, %p250_p9 }
  0x1a   :  { %v139_v27 = vld [vmem:[%s330_s2] ss:$0 sm:$0xff] }
  0x1b   :  { %197 = vmatpush3.bf16.msra.mxu0 %v196_v7  ;;  %p253_p12 = pnand %p252_p11, %p246_p8 }
  0x1c   :  { %198 = vmatprep.subr.bf16.mxu0 %v274_v0 }
  0x1f   :  { %200 = vmatpush3.bf16.msra.mxu0 %v199_v10 }
  0x20   :  { %201 = vmatprep.subr.bf16.mxu0 %v274_v0 }
  0x23   :  { %203 = vmatpush3.bf16.msra.mxu0 %v202_v13 }
  0x24   :  { %204 = vmatprep.subr.bf16.mxu0 %v274_v0 }
  0x27   :  { %206 = vmatpush3.bf16.msra.mxu0 %v205_v16 }
  0x28   :  { %207 = vmatprep.subr.bf16.mxu0 %v274_v0 }
  0x2b   :  { %209 = vmatpush3.bf16.msra.mxu0 %v208_v19 }
  0x2c   :  { %210 = vmatprep.subr.bf16.mxu0 %v274_v0 }
  0x2f   :  { %212 = vmatpush3.bf16.msra.mxu0 %v211_v22 }
  0x30   :  { %213 = vmatprep.subr.bf16.mxu0 %v274_v0 }
  0x33   :  { %215 = vmatpush3.bf16.msra.mxu0 %v214_v25 }
  0x36   :  { %190 = vmatmul.mubr.f32.vlgmr.msra.gmra.mrb[0].mxu0 %v29_v26 }
 0x109   :  { %v119_v28 = vpop.f32.mrb[0].mxu0 }
 0x10a   :  { %v120_v29 = vadd.f32 %v139_v27, %v119_v28  ;;  %v191_v30 = vpop.f32.mrb[1].mxu0 }
 0x10c   :  { %123 = vst [vmem:[#allocation5] sm:$0x3] %v120_v29 }
 0x10d   :  { %256 = shalt.err (!%p253_p12)
}
 0x10e   :  { %s257_s6 = scalar_lea.hbm %s331_s3, 32 }
 0x10f   :  { %p258_p13 = scmp.ne.s32.totalorder %s331_s3, %s257_s6  ;;  %p261_p0 = scmp.lt.u32.totalorder %s257_s6, %s331_s3 }
 0x111   :  { %p263_p1 = pnand %p261_p0, %p258_p13 }
 0x113   :  { %266 = shalt.err (!%p263_p1)
}
 0x114   :  { %133 = dma.vmem_to_hbm [thread:$0]  %s131_s30, 32, %s331_s3, [#allocation4]  }
 0x115   :  { %269 = dma.done.wait [#allocation4], 32  }
 0x116   :  { %270 = vsyncadd [#allocation4], 4294967264 }
 0x117   :  { %137 = vsyncpa [#allocation3], 1 }
 0x118   :  { %138 = vsyncpa [#allocation4], 1 }

</bundles_post_ra>
